<compile_context>
chip_gen: v5e
topology: v5e:2x2
jax: 0.10.0
libtpu: 0.0.40
codegen_flags: <defaults>
</compile_context>

<pallas_src>
import jax
import jax.numpy as jnp
from jax.experimental import pallas as pl
from jax.experimental.pallas import tpu as pltpu

_LANES = 128
_TARGET_BLOCK_BYTES = 8 * 1024 * 1024      # ~8 MiB blocks: near HBM roofline
_VMEM_LIMIT_BYTES = 48 * 1024 * 1024       # 2x(in)+2x(out) 8 MiB bufs = 32 MiB < 48 MiB
_MIN_PALLAS_BYTES_DEFAULT = 256 * 1024     # below this, let XLA fuse the sigmoid


def _sublane_multiple(itemsize: int) -> int:
    # Min sublane tile per packed dtype: 8 (32-bit), 16 (16-bit), 32 (8-bit).
    return {4: 8, 2: 16, 1: 32}.get(itemsize, 8)


def _sigmoid_kernel(x_ref, o_ref):
    # Upcast to f32 so bf16 inputs get a full-precision sigmoid; compute cost
    # is irrelevant for this memory-bound loop (exp routes to the EUP slot).
    x = x_ref[...].astype(jnp.float32)
    o_ref[...] = (1.0 / (1.0 + jnp.exp(-x))).astype(o_ref.dtype)


def _grid_semantics(grid_size: int):
    # v7x has 2 TensorCores per chip, each with its own HBM path: split the
    # grid across them with CORE_PARALLEL. v5e/v6e (1 TC) keep "parallel".
    try:
        kind = jax.devices()[0].device_kind.lower()
    except Exception:
        kind = ""
    if "v7" in kind and grid_size >= 2:
        return (pltpu.CORE_PARALLEL,)
    return ("parallel",)


def _sigmoid_rows128(x2d: jax.Array, out_dtype) -> jax.Array:
    rows = x2d.shape[0]
    itemsize = jnp.dtype(x2d.dtype).itemsize
    sub = _sublane_multiple(itemsize)

    # Byte-based block sizing (f32 -> 16384 rows, bf16 -> 32768 rows), rounded
    # to the sublane-packing multiple, never larger than needed for the array.
    target_rows = max(sub, (_TARGET_BLOCK_BYTES // (_LANES * itemsize)) // sub * sub)
    block_rows = min(target_rows, ((rows + sub - 1) // sub) * sub)
    grid = (pl.cdiv(rows, block_rows),)

    return pl.pallas_call(
        _sigmoid_kernel,
        out_shape=jax.ShapeDtypeStruct((rows, _LANES), out_dtype),
        grid_spec=pl.GridSpec(
            grid=grid,
            in_specs=[pl.BlockSpec((block_rows, _LANES), lambda i: (i, 0))],
            out_specs=pl.BlockSpec((block_rows, _LANES), lambda i: (i, 0)),
        ),
        compiler_params=pltpu.CompilerParams(
            dimension_semantics=_grid_semantics(grid[0]),
            vmem_limit_bytes=_VMEM_LIMIT_BYTES,
        ),
    )(x2d)


def sigmoid_pallas(x: jax.Array, *, min_pallas_bytes: int = _MIN_PALLAS_BYTES_DEFAULT) -> jax.Array:
    orig_shape = x.shape
    orig_dtype = x.dtype
    n = x.size
    if n == 0:
        return x

    nbytes = n * jnp.dtype(orig_dtype).itemsize
    n_main = (n // _LANES) * _LANES
    if nbytes < min_pallas_bytes or n_main == 0:
        # Tiny activation: pallas_call launch/DMA setup dominates; let XLA fuse.
        return (1.0 / (1.0 + jnp.exp(-x.astype(jnp.float32)))).astype(orig_dtype)

    # Free for contiguous default-layout inputs (metadata-only reshape).
    # TODO(synk): tile the original trailing dims directly when last dim % 128 == 0
    # to also cover non-default layouts without a copy.
    flat = jnp.reshape(x, (-1,))

    if n_main == n:
        out_flat = _sigmoid_rows128(
            flat.reshape(n // _LANES, _LANES), orig_dtype
        ).reshape(-1)
    else:
        # Lane-unaligned: kernel on the aligned prefix, <128-element tail via
        # XLA. Avoids the pad + final-slice full HBM copies of the old version.
        # TODO(synk): a single ragged-last-block pallas_call would also avoid the concat copy.
        main = _sigmoid_rows128(
            flat[:n_main].reshape(n_main // _LANES, _LANES), orig_dtype
        ).reshape(-1)
        tail = (1.0 / (1.0 + jnp.exp(-flat[n_main:].astype(jnp.float32)))).astype(orig_dtype)
        out_flat = jnp.concatenate([main, tail])

    return out_flat.reshape(orig_shape)


if __name__ == "__main__":
    key = jax.random.PRNGKey(0)

    # Small NCHW-like tensor ("input tensor of any shape"); force the Pallas
    # path (default threshold would route this tiny tensor to XLA).
    x = jax.random.normal(key, (2, 4, 16, 16), dtype=jnp.float32)
    y = sigmoid_pallas(x, min_pallas_bytes=0)
    jax.block_until_ready(y)

    ref = jax.nn.sigmoid(x)
    assert y.shape == x.shape and y.dtype == x.dtype
    assert jnp.allclose(y, ref, atol=1e-5, rtol=1e-5)

    # Lane-unaligned size: aligned prefix through the kernel, 37-element tail via XLA.
    x2 = jax.random.normal(jax.random.PRNGKey(0), (8 * 128 + 37,), dtype=jnp.float32)
    y2 = sigmoid_pallas(x2, min_pallas_bytes=0)
    jax.block_until_ready(y2)
    assert jnp.allclose(y2, jax.nn.sigmoid(x2), atol=1e-5, rtol=1e-5)

    print("KERNEL_OK")
</pallas_src>

<mosaic_0001>
module attributes {stable_mosaic.version = 11 : i64} {
  func.func @_sigmoid_kernel(%arg0: i32, %arg1: memref<16x128xf32, #tpu.memory_space<vmem>>, %arg2: memref<16x128xf32, #tpu.memory_space<vmem>>) attributes {dimension_semantics = [#tpu.dimension_semantics<parallel>], iteration_bounds = array<i64: 1>, scalar_prefetch = 0 : i64, scratch_operands = 0 : i64, tpu.core_type = #tpu.core_type<tc>, window_params = [{transform_indices = @transform_0, window_bounds = array<i64: 16, 128>}, {transform_indices = @transform_1, window_bounds = array<i64: 16, 128>}]} {
    %c0 = arith.constant 0 : index
    %c0_0 = arith.constant 0 : index
    %0 = vector.load %arg1[%c0, %c0_0] : memref<16x128xf32, #tpu.memory_space<vmem>>, vector<16x128xf32>
    %cst = arith.constant 0.000000e+00 : f32
    %1 = vector.broadcast %cst : f32 to vector<16x128xf32>
    %2 = arith.subf %1, %0 : vector<16x128xf32>
    %3 = math.exp %2 : vector<16x128xf32>
    %cst_1 = arith.constant 1.000000e+00 : f32
    %4 = vector.broadcast %cst_1 : f32 to vector<16x128xf32>
    %5 = arith.addf %4, %3 : vector<16x128xf32>
    %cst_2 = arith.constant 1.000000e+00 : f32
    %6 = vector.broadcast %cst_2 : f32 to vector<16x128xf32>
    %7 = arith.divf %6, %5 : vector<16x128xf32>
    %c0_3 = arith.constant 0 : index
    %c0_4 = arith.constant 0 : index
    %8 = vector.load %arg2[%c0_3, %c0_4] : memref<16x128xf32, #tpu.memory_space<vmem>>, vector<16x128xf32>
    tpu.vector_store %arg2[%c0_3, %c0_4], %7 {strides = array<i32>} : memref<16x128xf32, #tpu.memory_space<vmem>>, vector<16x128xf32>,
    return
  }
  func.func @transform_0(%arg0: i32) -> (i32, i32) {
    %c0_i32 = arith.constant 0 : i32
    %c0_i32_0 = arith.constant 0 : i32
    return %arg0, %c0_i32 : i32, i32
  }
  func.func @transform_1(%arg0: i32) -> (i32, i32) {
    %c0_i32 = arith.constant 0 : i32
    %c0_i32_0 = arith.constant 0 : i32
    return %arg0, %c0_i32 : i32, i32
  }
}

</mosaic_0001>

<bundles_post_ra>
// kernel: tpu_custom_call.1
= control target key start
LH: loop header
LB: loop body
LE: loop exit
PB: predicated region body
PF: predicated region fallthrough
CT: control target
= control target key end

     0   :  { %6 = vsyncpa [#allocation3], 0  ;;  %s176_s0 = inlined_call_operand.hbm [shape: f32[16,128], index: 0, kind: input, shape index: {}]   ;;  %s177_s1 = inlined_call_operand.hbm [shape: f32[16,128], index: 1, kind: output, shape index: {}]  }
   0x1   :  { %7 = vsyncpa [#allocation4], 0  ;;  %s12_s8 = sshll.u32 %s176_s0, 4  ;;  %s150_s9 = smov [#allocation2]   ;;  %s13_s8 = int_to_ptr.hbm [resolvable:$true] %s12_s8 }
   0x2   :  { %s14_s10 = sshll.u32 %s150_s9, 4  ;;  %s151_s11 = smov 128   ;;  %s15_s10 = int_to_ptr.vmem [resolvable:$true] %s14_s10 }
   0x3   :  { %s152_s12 = smov 8  }
   0x4   :  { %20 = dma.hbm_to_vmem [thread:$0]  %s13_s8, 256, %s15_s10, [#allocation3], %s151_s11, %s151_s11, %s152_s12  }
   0x5   :  { %146 = dma.done.wait [#allocation3], 256  }
   0x6   :  { %147 = vsyncadd [#allocation3], 4294967040  ;;  %v25_v0 = vld [vmem:[#allocation2] sm:$0xff]  ;;  %v26_v1 = vld [vmem:[#allocation2 + $0x8] sm:$0xff]  ;;  %s153_s0 = smov [#allocation5]   ;;  %s73_s16 = sshll.u32 %s177_s1, 4  ;;  %s74_s16 = int_to_ptr.hbm [resolvable:$true] %s73_s16 }
   0x7   :  { %v27_v2 = vsub.f32 0.0, %v25_v0  ;;  %v28_v3 = vsub.f32 0.0, %v26_v1  ;;  %s71_s13 = sshll.u32 %s153_s0, 4  ;;  %s72_s13 = int_to_ptr.vmem [resolvable:$true] %s71_s13 }
   0x9   :  { %v29_v4 = vmul.f32 1.442695, %v27_v2  ;;  %v31_v5 = vmul.f32 1.442695, %v28_v3 }
   0xb   :  { %90 = vpow2.f32 %v29_v4 }
   0xc   :  { %92 = vpow2.f32 %v31_v5 }
  0x11   :  { %v91_v6 = vpop.eup %90 }
  0x12   :  { %v93_v7 = vpop.eup %92  ;;  %v33_v8 = vadd.f32 1.0, %v91_v6 }
  0x13   :  { %v34_v9 = vadd.f32 1.0, %v93_v7 }
  0x14   :  { %94 = vrcp.f32 %v33_v8  ;;  %vm40_vm0 = vweird.f32 %v33_v8  ;;  %v46_v13 = vand.u32 2147483648, %v33_v8  ;;  %v44_v16 = vand.u32 2147483647, %v33_v8 }
  0x15   :  { %96 = vrcp.f32 %v34_v9  ;;  %v61_v17 = vand.u32 2147483648, %v34_v9  ;;  %vm55_vm2 = vweird.f32 %v34_v9  ;;  %v59_v19 = vand.u32 2147483647, %v34_v9 }
  0x16   :  { %v47_v21 = vor.u32 1.1754944e-38, %v46_v13  ;;  %vm45_vm5 = vcmp.eq.f32.partialorder %v44_v16, 8.507059e+37 }
  0x17   :  { %v62_v24 = vor.u32 1.1754944e-38, %v61_v17  ;;  %vm60_vm7 = vcmp.eq.f32.partialorder %v59_v19, 8.507059e+37 }
  0x1a   :  { %v95_v10 = vpop.eup %94 }
  0x1b   :  { %v97_v11 = vpop.eup %96  ;;  %v36_v12 = vmul.f32 %v95_v10, %v33_v8  ;;  %vm41_vm1 = vweird.f32 %v95_v10 }
  0x1c   :  { %v51_v14 = vmul.f32 %v97_v11, %v34_v9  ;;  %vm56_vm3 = vweird.f32 %v97_v11  ;;  %vm42_vm4 = vmor %vm40_vm0, %vm41_vm1 }
  0x1d   :  { %v37_v15 = vsub.f32 1.0, %v36_v12  ;;  %vm57_vm6 = vmor %vm55_vm2, %vm56_vm3 }
  0x1e   :  { %v52_v18 = vsub.f32 1.0, %v51_v14 }
  0x1f   :  { %v38_v20 = vmul.f32 %v95_v10, %v37_v15 }
  0x20   :  { %v53_v22 = vmul.f32 %v97_v11, %v52_v18 }
  0x21   :  { %v39_v23 = vadd.f32 %v95_v10, %v38_v20 }
  0x22   :  { %v54_v25 = vadd.f32 %v97_v11, %v53_v22 }
  0x23   :  { %v43_v26 = vsel %vm42_vm4, %v95_v10, %v39_v23 }
  0x24   :  { %v48_v27 = vsel %vm45_vm5, %v47_v21, %v43_v26  ;;  %v58_v28 = vsel %vm57_vm6, %v97_v11, %v54_v25 }
  0x25   :  { %65 = vst [vmem:[#allocation5] sm:$0xff] %v48_v27  ;;  %v63_v29 = vsel %vm60_vm7, %v62_v24, %v58_v28 }
  0x26   :  { %66 = vst [vmem:[#allocation5 + $0x8] sm:$0xff] %v63_v29 }
  0x27   :  { %79 = dma.vmem_to_hbm [thread:$0]  %s72_s13, 256, %s74_s16, [#allocation4], %s151_s11, %s151_s11, %s152_s12  }
  0x28   :  { %148 = dma.done.wait [#allocation4], 256  }
  0x29   :  { %149 = vsyncadd [#allocation4], 4294967040 }
  0x2a   :  { %84 = vsyncpa [#allocation3], 1 }
  0x2b   :  { %85 = vsyncpa [#allocation4], 1 }

</bundles_post_ra>
